<compile_context>
chip_gen: v7x
topology: tpu7x:2x2x1
jax: 0.10.0
libtpu: 0.0.40
codegen_flags: <defaults>
</compile_context>

<pallas_src>
import numpy as np
import jax
import jax.numpy as jnp
from jax.experimental import pallas as pl
from jax.experimental.pallas import tpu as pltpu


# -----------------------------------------------------------------------------
# Pallas kernel: single-layer unidirectional LSTM, one (batch tile, time chunk).
#   tmax_ref : SMEM (num_tiles,) int32   per-tile max valid length (scalar prefetch)
#   len_ref  : VMEM (Bt, 1)      int32   valid length per sequence (kernel order)
#   x_ref    : VMEM (Ts, Bt, E)  bf16    embedded inputs, time-major chunk
#   wih_ref  : VMEM (E, 4H)      bf16    W_ih^T, i/f/o columns pre-halved
#   whh_ref  : VMEM (H, 4H)      bf16    W_hh^T, i/f/o columns pre-halved
#   b_ref    : VMEM (1, 4H)      f32     b_ih + b_hh, i/f/o entries pre-halved
# Outputs:
#   out_ref  : VMEM (Ts, Bt, H)  bf16    per-step hidden states (0 beyond lengths)
#   hn_ref   : VMEM (Bt, H)      f32     last valid hidden state (written last chunk)
# Scratch (persist across grid steps -> carry h/c over time chunks):
#   gates_scr: VMEM (Ts*Bt, 4H)  f32     per-chunk precomputed x@W_ih + b
#   h_scr/c_scr : VMEM (Bt, H)   f32     recurrent state
#   hbf_scr  : VMEM (Bt, H)      bf16    resident bf16 copy of h for the MXU
# -----------------------------------------------------------------------------
def lstm_kernel(tmax_ref, len_ref, x_ref, wih_ref, whh_ref, b_ref,
                out_ref, hn_ref, gates_scr, h_scr, c_scr, hbf_scr):
    Ts, Bt, E = x_ref.shape
    H = whh_ref.shape[0]
    G = 4 * H

    tile = pl.program_id(0)
    chunk = pl.program_id(1)
    t0 = chunk * Ts
    t_max = tmax_ref[tile]
    # Number of valid timesteps inside this chunk for this batch tile.
    n_valid = jnp.minimum(jnp.maximum(t_max - t0, 0), Ts)

    # ---- per-tile state init (first time chunk) ----------------------------
    @pl.when(chunk == 0)
    def _():
        h_scr[...] = jnp.zeros_like(h_scr)
        c_scr[...] = jnp.zeros_like(c_scr)
        hbf_scr[...] = jnp.zeros_like(hbf_scr)

    # ---- zero only chunks that have a dead tail (t >= t_max) ---------------
    @pl.when(n_valid < Ts)
    def _():
        out_ref[...] = jnp.zeros_like(out_ref)

    # ---- phase 1: hoisted per-chunk input projection (skipped if dead) -----
    @pl.when(n_valid > 0)
    def _():
        x_all = x_ref[...].reshape(Ts * Bt, E)          # leading-dims merge only
        gates_scr[...] = (
            jnp.dot(x_all, wih_ref[...], preferred_element_type=jnp.float32)
            + b_ref[...])

    # ---- phase 2: length-bounded recurrence ---------------------------------
    lengths = len_ref[...]                              # (Bt, 1) int32
    whh = whh_ref[...]                                  # (H, 4H) bf16, resident

    # Lane constants for ONE lane-dense tanh over (Bt, 4H):
    #   i/f/o lanes (weights pre-halved in wrapper): 0.5*tanh(z/2)+0.5 == sigmoid(z)
    #   cell lanes:                                   tanh(z)
    lane = jax.lax.broadcasted_iota(jnp.int32, (1, G), 1)
    is_cell = jnp.logical_and(lane >= 2 * H, lane < 3 * H)
    post_a = jnp.where(is_cell, 1.0, 0.5).astype(jnp.float32)
    post_b = jnp.where(is_cell, 0.0, 0.5).astype(jnp.float32)

    @pl.loop(0, n_valid)                                # 0-trip for dead chunks
    def _(t):
        row = pl.multiple_of(t * Bt, Bt)                # sublane-aligned slice
        g = gates_scr[pl.ds(row, Bt), :] + jnp.dot(
            hbf_scr[...], whh, preferred_element_type=jnp.float32)   # (Bt, 4H) f32

        act = post_a * jnp.tanh(g) + post_b             # single lane-dense EUP op
        i_g = act[:, 0 * H:1 * H]
        f_g = act[:, 1 * H:2 * H]
        g_g = act[:, 2 * H:3 * H]
        o_g = act[:, 3 * H:4 * H]

        c_new = f_g * c_scr[...] + i_g * g_g
        h_new = o_g * jnp.tanh(c_new)

        valid = (t0 + t) < lengths                      # packed-sequence mask
        h_kept = jnp.where(valid, h_new, h_scr[...])    # freeze past length
        h_scr[...] = h_kept
        c_scr[...] = jnp.where(valid, c_new, c_scr[...])
        hbf_scr[...] = h_kept.astype(hbf_scr.dtype)     # resident bf16 h for MXU
        out_ref[t] = jnp.where(valid, h_new, 0.0).astype(out_ref.dtype)

    # ---- finalize h_n at the last time chunk (hn block resident over chunks)
    @pl.when(chunk == pl.num_programs(1) - 1)
    def _():
        hn_ref[...] = h_scr[...]


# -----------------------------------------------------------------------------
# VMEM budgeting (chip-aware) and tile selection
# -----------------------------------------------------------------------------
_TPU_VMEM_CAP = None


def _vmem_capacity_bytes():
    global _TPU_VMEM_CAP
    if _TPU_VMEM_CAP is None:
        cap = 64 << 20                                   # conservative (v7x) fallback
        try:
            info = pltpu.get_tpu_info()
            cap = int(getattr(info, "vmem_capacity_bytes", cap)) or cap
        except Exception:
            pass
        _TPU_VMEM_CAP = cap
    return _TPU_VMEM_CAP


def _vmem_bytes_estimate(bt, ts, e, h, in_bytes=2, out_bytes=2):
    g = 4 * h
    x_blocks = 2 * ts * bt * e * in_bytes               # double-buffered input chunk
    out_blocks = 2 * ts * bt * h * out_bytes             # double-buffered output chunk
    gates = ts * bt * g * 4                               # f32 per-chunk gates scratch
    weights = 2 * ((e + h) * g * in_bytes + g * 4)
    lengths = 2 * bt * 4
    state = bt * h * (4 + 4 + 2)                          # h f32, c f32, h bf16
    hn = 2 * bt * h * 4
    return x_blocks + out_blocks + gates + weights + lengths + state + hn


def _choose_batch_tile(b, ts, e, h, budget_bytes, cap=256):
    # cap=256 fills the MXU M dim on v6e/v7x; >=128 is already enough on v5e.
    bt = min(cap, ((b + 7) // 8) * 8)
    bt = max(8, (bt // 8) * 8)
    while bt > 8 and _vmem_bytes_estimate(bt, ts, e, h) > budget_bytes:
        bt -= 8
    return bt


def _snake_order(n):
    # Interleave tiles (sorted longest-first) so contiguous halves of the
    # "parallel" tile axis have balanced total work across the two v7x cores.
    order, lo, hi = [], 0, n - 1
    while lo <= hi:
        order.append(lo)
        if hi != lo:
            order.append(hi)
        lo += 1
        hi -= 1
    return np.asarray(order, dtype=np.int64)


# -----------------------------------------------------------------------------
# pallas_call wrapper: (batch tile, time chunk) grid, resident weights,
# scalar-prefetched per-tile max lengths, parallel batch axis.
# -----------------------------------------------------------------------------
def _run_lstm(tile_max, lengths_2d, x_tm, wih_s, whh_s, b_s, *, bt, ts):
    s_pad, b_pad, E = x_tm.shape
    H = whh_s.shape[0]
    G = 4 * H
    num_tiles = b_pad // bt
    num_chunks = s_pad // ts

    grid_spec = pltpu.PrefetchScalarGridSpec(
        num_scalar_prefetch=1,
        grid=(num_tiles, num_chunks),
        in_specs=[
            pl.BlockSpec((bt, 1), lambda i, c, tm: (i, 0)),        # lengths
            pl.BlockSpec((ts, bt, E), lambda i, c, tm: (c, i, 0)),  # x chunk (time-major)
            pl.BlockSpec((E, G), lambda i, c, tm: (0, 0)),          # W_ih^T (resident)
            pl.BlockSpec((H, G), lambda i, c, tm: (0, 0)),          # W_hh^T (resident)
            pl.BlockSpec((1, G), lambda i, c, tm: (0, 0)),          # bias   (resident)
        ],
        out_specs=[
            pl.BlockSpec((ts, bt, H), lambda i, c, tm: (c, i, 0)),  # per-step hidden
            pl.BlockSpec((bt, H), lambda i, c, tm: (i, 0)),         # h_n (resident/acc)
        ],
        scratch_shapes=[
            pltpu.VMEM((ts * bt, G), jnp.float32),                  # per-chunk gates
            pltpu.VMEM((bt, H), jnp.float32),                       # h state
            pltpu.VMEM((bt, H), jnp.float32),                       # c state
            pltpu.VMEM((bt, H), jnp.bfloat16),                      # bf16 h for MXU
        ],
    )

    cap = _vmem_capacity_bytes()
    limit_cap = int(cap * 0.80)                  # leave headroom (esp. v7x 64 MiB)
    est = _vmem_bytes_estimate(bt, ts, E, H)
    vmem_limit = int(min(limit_cap, max(32 << 20, 2 * est)))

    return pl.pallas_call(
        lstm_kernel,
        grid_spec=grid_spec,
        out_shape=(
            jax.ShapeDtypeStruct((s_pad, b_pad, H), jnp.bfloat16),
            jax.ShapeDtypeStruct((b_pad, H), jnp.float32),
        ),
        compiler_params=pltpu.CompilerParams(
            dimension_semantics=("parallel", "arbitrary"),
            vmem_limit_bytes=vmem_limit,
        ),
    )(tile_max, lengths_2d, x_tm, wih_s, whh_s, b_s)


# -----------------------------------------------------------------------------
# Parameter init (mirrors nn.Embedding / nn.LSTM shapes; f32 storage)
# -----------------------------------------------------------------------------
def init_params(vocab_size, word_embedding_size, hidden_size, key):
    k0, k1, k2, k3, k4 = jax.random.split(key, 5)
    E, H = word_embedding_size, hidden_size
    k = 1.0 / np.sqrt(H)
    return {
        "embedding": jax.random.normal(k0, (vocab_size, E), jnp.float32),
        "w_ih": jax.random.uniform(k1, (4 * H, E), jnp.float32, -k, k),
        "w_hh": jax.random.uniform(k2, (4 * H, H), jnp.float32, -k, k),
        "b_ih": jax.random.uniform(k3, (4 * H,), jnp.float32, -k, k),
        "b_hh": jax.random.uniform(k4, (4 * H,), jnp.float32, -k, k),
    }


# -----------------------------------------------------------------------------
# Device-side encode at static shapes (one compile per (B, S)).
# -----------------------------------------------------------------------------
@jax.jit
def _encode(input_labels, params):
    B, S = input_labels.shape
    emb_tbl = params["embedding"].astype(jnp.bfloat16)          # bf16 storage
    E = emb_tbl.shape[1]
    H = params["w_hh"].shape[1]
    G = 4 * H

    lengths = jnp.sum(input_labels != 0, axis=1).astype(jnp.int32)     # (B,)
    sort_ixs = jnp.argsort(-lengths).astype(jnp.int32)                 # descending

    # masked embedded output (pad_packed(pack_padded(.)) == zero past length)
    embedded = emb_tbl[input_labels]                                   # (B, S, E)
    valid = jnp.arange(S, dtype=jnp.int32)[None, :] < lengths[:, None]
    embedded_masked = jnp.where(valid[:, :, None], embedded,
                                jnp.zeros((), embedded.dtype))

    # static tiling choices
    ts = min(S, 16)
    s_pad = ((S + ts - 1) // ts) * ts
    cap = _vmem_capacity_bytes()
    budget = int(cap * 0.75)
    bt = _choose_batch_tile(B, ts, E, H, budget)
    b_pad = ((B + bt - 1) // bt) * bt
    num_tiles = b_pad // bt
    pad_b = b_pad - B

    # snake-interleave batch tiles for v7x megacore balance (static permutation)
    tile_order = _snake_order(num_tiles)
    batch_perm = (tile_order[:, None] * bt + np.arange(bt)[None, :]).reshape(-1)

    labels_p = jnp.pad(input_labels, ((0, pad_b), (0, s_pad - S)))
    len_p = jnp.pad(lengths, (0, pad_b))
    sort_full = jnp.concatenate(
        [sort_ixs, jnp.arange(B, b_pad, dtype=jnp.int32)])
    kernel_ix = sort_full[jnp.asarray(batch_perm, dtype=jnp.int32)]    # (b_pad,)

    labels_k = labels_p[kernel_ix]                                     # (b_pad, s_pad)
    len_k = len_p[kernel_ix]
    # Gather the embedding directly into time-major kernel layout (fused transpose).
    x_tm = emb_tbl[labels_k.T]                                         # (s_pad, b_pad, E)
    tile_max = jnp.max(len_k.reshape(num_tiles, bt), axis=1).astype(jnp.int32)

    # Pre-halve the i/f/o gate columns so the kernel can use a single lane-dense
    # tanh: sigmoid(z) = 0.5*tanh(z/2)+0.5. Cell (g) columns stay unscaled.
    col_scale = np.ones((G,), np.float32)
    col_scale[:2 * H] = 0.5
    col_scale[3 * H:] = 0.5
    wih_s = (params["w_ih"].T * col_scale).astype(jnp.bfloat16)        # (E, 4H)
    whh_s = (params["w_hh"].T * col_scale).astype(jnp.bfloat16)        # (H, 4H)
    b_s = ((params["b_ih"] + params["b_hh"]) * col_scale
           ).astype(jnp.float32)[None, :]                              # (1, 4H)

    out_tm, hn = _run_lstm(tile_max, len_k[:, None], x_tm, wih_s, whh_s, b_s,
                           bt=bt, ts=ts)

    recover = jnp.argsort(kernel_ix)                                   # orig -> kernel slot
    out_bm = jnp.transpose(out_tm, (1, 0, 2))[:, :S]                   # (b_pad, S, H)
    output = out_bm[recover[:B]]
    hidden = hn[recover[:B]]
    return output, hidden, embedded_masked, lengths


def rnn_encoder_forward(input_labels, pretrain_feats, params):
    """RNNEncoder.forward (variable_lengths=True, rnn_type='lstm', n_layers=1,
    bidirectional=False, eval mode)."""
    del pretrain_feats  # unused in the reference forward
    output, hidden, embedded, lengths = _encode(input_labels, params)
    # One small scalar sync to return the Python-int max_length and truncate,
    # matching the PyTorch module (which also syncs via .tolist()).
    max_length = int(jnp.max(lengths))
    return output[:, :max_length], hidden, embedded[:, :max_length], max_length


# -----------------------------------------------------------------------------
# Pure-JAX reference with matching numerics (bf16 storage, f32 state/accumulation)
# -----------------------------------------------------------------------------
def reference_forward(input_labels, params):
    B, S = input_labels.shape
    H = params["w_hh"].shape[1]
    emb_tbl = params["embedding"].astype(jnp.bfloat16)
    wih_t = params["w_ih"].T.astype(jnp.bfloat16)
    whh_t = params["w_hh"].T.astype(jnp.bfloat16)
    b_sum = (params["b_ih"] + params["b_hh"]).astype(jnp.float32)[None, :]

    lengths = jnp.sum(input_labels != 0, axis=1).astype(jnp.int32)
    x = emb_tbl[input_labels]                                          # (B, S, E) bf16
    gates_x = jnp.dot(x.reshape(B * S, -1), wih_t,
                      preferred_element_type=jnp.float32).reshape(B, S, 4 * H) + b_sum

    h = jnp.zeros((B, H), jnp.float32)
    c = jnp.zeros((B, H), jnp.float32)
    len_col = lengths[:, None]
    outs = []
    for t in range(S):
        g = gates_x[:, t, :] + jnp.dot(h.astype(jnp.bfloat16), whh_t,
                                       preferred_element_type=jnp.float32)
        i_g = jax.nn.sigmoid(g[:, 0 * H:1 * H])
        f_g = jax.nn.sigmoid(g[:, 1 * H:2 * H])
        g_g = jnp.tanh(g[:, 2 * H:3 * H])
        o_g = jax.nn.sigmoid(g[:, 3 * H:4 * H])
        c_new = f_g * c + i_g * g_g
        h_new = o_g * jnp.tanh(c_new)
        v = t < len_col
        h = jnp.where(v, h_new, h)
        c = jnp.where(v, c_new, c)
        outs.append(jnp.where(v, h_new, 0.0))
    out = jnp.stack(outs, axis=1).astype(jnp.bfloat16)
    valid = jnp.arange(S)[None, :] < len_col
    emb_masked = jnp.where(valid[:, :, None], x, jnp.zeros((), x.dtype))
    T = int(jnp.max(lengths))
    return out[:, :T], h, emb_masked[:, :T], T


if __name__ == "__main__":
    # Small shapes consistent with the module: batch=2, seq=8, embed=32, hidden=32.
    vocab_size, E, H = 20, 32, 32
    B, S = 2, 8
    seq_lens = np.array([6, 8], dtype=np.int32)   # right-padded with 0 tokens

    key = jax.random.PRNGKey(0)
    k_tok, k_par = jax.random.split(key)
    toks = jax.random.randint(k_tok, (B, S), 1, vocab_size, dtype=jnp.int32)
    pos = np.arange(S)[None, :]
    input_labels = jnp.asarray(
        np.where(pos < seq_lens[:, None], np.asarray(toks), 0), jnp.int32)

    params = init_params(vocab_size, E, H, k_par)

    output, hidden, embedded, max_length = rnn_encoder_forward(input_labels, None, params)
    jax.block_until_ready((output, hidden, embedded))

    ref_out, ref_h, ref_emb, ref_T = reference_forward(input_labels, params)

    def f32(a):
        return np.asarray(a.astype(jnp.float32))

    np.testing.assert_allclose(f32(output), f32(ref_out), rtol=2e-2, atol=2e-2)
    np.testing.assert_allclose(f32(hidden), f32(ref_h), rtol=2e-2, atol=2e-2)
    np.testing.assert_allclose(f32(embedded), f32(ref_emb), rtol=2e-2, atol=2e-2)
    assert max_length == ref_T == int(seq_lens.max())

    print("KERNEL_OK")
</pallas_src>

<mosaic_0001>
module attributes {stable_mosaic.version = 11 : i64} {
  func.func @lstm_kernel(%arg0: i32, %arg1: i32, %arg2: memref<1xi32, #tpu.memory_space<smem>>, %arg3: memref<8x1xi32, #tpu.memory_space<vmem>>, %arg4: memref<8x8x32xbf16, #tpu.memory_space<vmem>>, %arg5: memref<32x128xbf16, #tpu.memory_space<vmem>>, %arg6: memref<32x128xbf16, #tpu.memory_space<vmem>>, %arg7: memref<1x128xf32, #tpu.memory_space<vmem>>, %arg8: memref<8x8x32xbf16, #tpu.memory_space<vmem>>, %arg9: memref<8x32xf32, #tpu.memory_space<vmem>>, %arg10: memref<64x128xf32, #tpu.memory_space<vmem>>, %arg11: memref<8x32xf32, #tpu.memory_space<vmem>>, %arg12: memref<8x32xf32, #tpu.memory_space<vmem>>, %arg13: memref<8x32xbf16, #tpu.memory_space<vmem>>) attributes {dimension_semantics = [#tpu.dimension_semantics<parallel>, #tpu.dimension_semantics<arbitrary>], iteration_bounds = array<i64: 1, 1>, scalar_prefetch = 1 : i64, scratch_operands = 4 : i64, tpu.core_type = #tpu.core_type<tc>, window_params = [{transform_indices = @transform_0, window_bounds = array<i64: 8, 1>}, {transform_indices = @transform_1, window_bounds = array<i64: 8, 8, 32>}, {pipeline_mode = #tpu.pipeline_mode<synchronous>, transform_indices = @transform_2, window_bounds = array<i64: 32, 128>}, {pipeline_mode = #tpu.pipeline_mode<synchronous>, transform_indices = @transform_3, window_bounds = array<i64: 32, 128>}, {pipeline_mode = #tpu.pipeline_mode<synchronous>, transform_indices = @transform_4, window_bounds = array<i64: 1, 128>}, {transform_indices = @transform_5, window_bounds = array<i64: 8, 8, 32>}, {transform_indices = @transform_6, window_bounds = array<i64: 8, 32>}]} {
    %c8_i32 = arith.constant 8 : i32
    %0 = arith.muli %arg1, %c8_i32 : i32
    %1 = arith.index_cast %arg0 : i32 to index
    %2 = memref.load %arg2[%1] : memref<1xi32, #tpu.memory_space<smem>>
    %3 = arith.subi %2, %0 : i32
    %c0_i32 = arith.constant 0 : i32
    %4 = arith.maxsi %3, %c0_i32 : i32
    %c8_i32_0 = arith.constant 8 : i32
    %5 = arith.minsi %4, %c8_i32_0 : i32
    %c0_i32_1 = arith.constant 0 : i32
    %6 = arith.cmpi eq, %arg1, %c0_i32_1 : i32
    %7 = arith.extui %6 : i1 to i32
    %c0_i32_2 = arith.constant 0 : i32
    %8 = arith.cmpi ne, %7, %c0_i32_2 : i32
    scf.if %8 {
      %cst_22 = arith.constant 0.000000e+00 : f32
      %38 = vector.broadcast %cst_22 : f32 to vector<8x32xf32>
      %c0_23 = arith.constant 0 : index
      %c0_24 = arith.constant 0 : index
      %39 = vector.load %arg11[%c0_23, %c0_24] : memref<8x32xf32, #tpu.memory_space<vmem>>, vector<8x32xf32>
      tpu.vector_store %arg11[%c0_23, %c0_24], %38 {strides = array<i32>} : memref<8x32xf32, #tpu.memory_space<vmem>>, vector<8x32xf32>,
      %cst_25 = arith.constant 0.000000e+00 : f32
      %40 = vector.broadcast %cst_25 : f32 to vector<8x32xf32>
      %c0_26 = arith.constant 0 : index
      %c0_27 = arith.constant 0 : index
      %41 = vector.load %arg12[%c0_26, %c0_27] : memref<8x32xf32, #tpu.memory_space<vmem>>, vector<8x32xf32>
      tpu.vector_store %arg12[%c0_26, %c0_27], %40 {strides = array<i32>} : memref<8x32xf32, #tpu.memory_space<vmem>>, vector<8x32xf32>,
      %cst_28 = arith.constant 0.000000e+00 : bf16
      %42 = vector.broadcast %cst_28 : bf16 to vector<8x32xbf16>
      %c0_29 = arith.constant 0 : index
      %c0_30 = arith.constant 0 : index
      %43 = vector.load %arg13[%c0_29, %c0_30] : memref<8x32xbf16, #tpu.memory_space<vmem>>, vector<8x32xbf16>
      tpu.vector_store %arg13[%c0_29, %c0_30], %42 {strides = array<i32>} : memref<8x32xbf16, #tpu.memory_space<vmem>>, vector<8x32xbf16>,
    } else {
    }
    %c8_i32_3 = arith.constant 8 : i32
    %9 = arith.cmpi slt, %5, %c8_i32_3 : i32
    %10 = arith.extui %9 : i1 to i32
    %c0_i32_4 = arith.constant 0 : i32
    %11 = arith.cmpi ne, %10, %c0_i32_4 : i32
    scf.if %11 {
      %cst_22 = arith.constant 0.000000e+00 : bf16
      %38 = vector.broadcast %cst_22 : bf16 to vector<8x8x32xbf16>
      %c0_23 = arith.constant 0 : index
      %c0_24 = arith.constant 0 : index
      %c0_25 = arith.constant 0 : index
      %39 = vector.load %arg8[%c0_23, %c0_24, %c0_25] : memref<8x8x32xbf16, #tpu.memory_space<vmem>>, vector<8x8x32xbf16>
      tpu.vector_store %arg8[%c0_23, %c0_24, %c0_25], %38 {strides = array<i32>} : memref<8x8x32xbf16, #tpu.memory_space<vmem>>, vector<8x8x32xbf16>,
    } else {
    }
    %c0_i32_5 = arith.constant 0 : i32
    %12 = arith.cmpi sgt, %5, %c0_i32_5 : i32
    %13 = arith.extui %12 : i1 to i32
    %c0_i32_6 = arith.constant 0 : i32
    %14 = arith.cmpi ne, %13, %c0_i32_6 : i32
    scf.if %14 {
      %c0_22 = arith.constant 0 : index
      %c0_23 = arith.constant 0 : index
      %c0_24 = arith.constant 0 : index
      %38 = vector.load %arg4[%c0_22, %c0_23, %c0_24] : memref<8x8x32xbf16, #tpu.memory_space<vmem>>, vector<8x8x32xbf16>
      %39 = vector.shape_cast %38 : vector<8x8x32xbf16> to vector<64x32xbf16>
      %c0_25 = arith.constant 0 : index
      %c0_26 = arith.constant 0 : index
      %40 = vector.load %arg5[%c0_25, %c0_26] : memref<32x128xbf16, #tpu.memory_space<vmem>>, vector<32x128xbf16>
      %cst_27 = arith.constant dense<0.000000e+00> : vector<64x128xf32>
      %41 = tpu.matmul %39, %40, %cst_27 {dimension_numbers = #tpu.dot_dimension_numbers<[1], [0], [0], [1], [0, 0, 1, 1], [], []>} : vector<64x32xbf16>, vector<32x128xbf16>, vector<64x128xf32> -> vector<64x128xf32>
      %c0_28 = arith.constant 0 : index
      %c0_29 = arith.constant 0 : index
      %42 = vector.load %arg7[%c0_28, %c0_29] : memref<1x128xf32, #tpu.memory_space<vmem>>, vector<1x128xf32>
      %43 = vector.broadcast %42 : vector<1x128xf32> to vector<64x128xf32>
      %44 = arith.addf %41, %43 : vector<64x128xf32>
      %c0_30 = arith.constant 0 : index
      %c0_31 = arith.constant 0 : index
      %45 = vector.load %arg10[%c0_30, %c0_31] : memref<64x128xf32, #tpu.memory_space<vmem>>, vector<64x128xf32>
      tpu.vector_store %arg10[%c0_30, %c0_31], %44 {strides = array<i32>} : memref<64x128xf32, #tpu.memory_space<vmem>>, vector<64x128xf32>,
    } else {
    }
    %c0 = arith.constant 0 : index
    %c0_7 = arith.constant 0 : index
    %15 = vector.load %arg3[%c0, %c0_7] : memref<8x1xi32, #tpu.memory_space<vmem>>, vector<8x1xi32>
    %c0_8 = arith.constant 0 : index
    %c0_9 = arith.constant 0 : index
    %16 = vector.load %arg6[%c0_8, %c0_9] : memref<32x128xbf16, #tpu.memory_space<vmem>>, vector<32x128xbf16>
    %17 = tpu.iota {dimensions = array<i32: 1>} : vector<1x128xi32>
    %c64_i32 = arith.constant 64 : i32
    %18 = vector.broadcast %c64_i32 : i32 to vector<1x128xi32>
    %19 = arith.cmpi sge, %17, %18 : vector<1x128xi32>
    %c96_i32 = arith.constant 96 : i32
    %20 = vector.broadcast %c96_i32 : i32 to vector<1x128xi32>
    %21 = arith.cmpi slt, %17, %20 : vector<1x128xi32>
    %22 = arith.andi %19, %21 : vector<1x128xi1>
    %cst = arith.constant 1.000000e+00 : f32
    %cst_10 = arith.constant 5.000000e-01 : f32
    %23 = vector.broadcast %cst : f32 to vector<1x128xf32>
    %24 = vector.broadcast %cst_10 : f32 to vector<1x128xf32>
    %25 = arith.select %22, %23, %24 : vector<1x128xi1>, vector<1x128xf32>
    %cst_11 = arith.constant 0.000000e+00 : f32
    %cst_12 = arith.constant 5.000000e-01 : f32
    %26 = vector.broadcast %cst_11 : f32 to vector<1x128xf32>
    %27 = vector.broadcast %cst_12 : f32 to vector<1x128xf32>
    %28 = arith.select %22, %26, %27 : vector<1x128xi1>, vector<1x128xf32>
    %c0_i32_13 = arith.constant 0 : i32
    %29 = arith.subi %5, %c0_i32_13 : i32
    %c1_i32 = arith.constant 1 : i32
    %c1_i32_14 = arith.constant 1 : i32
    %30 = arith.subi %c1_i32, %c1_i32_14 : i32
    %31 = arith.addi %29, %30 : i32
    %c1_i32_15 = arith.constant 1 : i32
    %32 = arith.divsi %31, %c1_i32_15 : i32
    %c1_i32_16 = arith.constant 1 : i32
    %c0_i32_17 = arith.constant 0 : i32
    %c0_i32_18 = arith.constant 0 : i32
    %33 = arith.subi %32, %c0_i32_18 : i32
    %34 = arith.addi %c0_i32_18, %33 : i32
    %c1_i32_19 = arith.constant 1 : i32
    scf.for %arg14 = %c0_i32_18 to %34 step %c1_i32_19  : i32 {
      %38 = arith.muli %arg14, %c1_i32_16 : i32
      %39 = arith.addi %c0_i32_17, %38 : i32
      %c8_i32_22 = arith.constant 8 : i32
      %40 = arith.muli %39, %c8_i32_22 : i32
      %41 = tpu.assume_multiple %40, 8 : i32
      %42 = arith.index_cast %41 : i32 to index
      %c0_23 = arith.constant 0 : index
      %43 = vector.load %arg10[%42, %c0_23] : memref<64x128xf32, #tpu.memory_space<vmem>>, vector<8x128xf32>
      %c0_24 = arith.constant 0 : index
      %c0_25 = arith.constant 0 : index
      %44 = vector.load %arg13[%c0_24, %c0_25] : memref<8x32xbf16, #tpu.memory_space<vmem>>, vector<8x32xbf16>
      %cst_26 = arith.constant dense<0.000000e+00> : vector<8x128xf32>
      %45 = tpu.matmul %44, %16, %cst_26 {dimension_numbers = #tpu.dot_dimension_numbers<[1], [0], [0], [1], [0, 0, 1, 1], [], []>} : vector<8x32xbf16>, vector<32x128xbf16>, vector<8x128xf32> -> vector<8x128xf32>
      %46 = arith.addf %43, %45 : vector<8x128xf32>
      %47 = math.tanh %46 : vector<8x128xf32>
      %48 = vector.broadcast %25 : vector<1x128xf32> to vector<8x128xf32>
      %49 = arith.mulf %48, %47 : vector<8x128xf32>
      %50 = vector.broadcast %28 : vector<1x128xf32> to vector<8x128xf32>
      %51 = arith.addf %49, %50 : vector<8x128xf32>
      %52 = vector.extract_strided_slice %51 {offsets = [0, 0], sizes = [8, 32], strides = [1, 1]} : vector<8x128xf32> to vector<8x32xf32>
      %53 = vector.extract_strided_slice %51 {offsets = [0, 32], sizes = [8, 32], strides = [1, 1]} : vector<8x128xf32> to vector<8x32xf32>
      %54 = vector.extract_strided_slice %51 {offsets = [0, 64], sizes = [8, 32], strides = [1, 1]} : vector<8x128xf32> to vector<8x32xf32>
      %55 = vector.extract_strided_slice %51 {offsets = [0, 96], sizes = [8, 32], strides = [1, 1]} : vector<8x128xf32> to vector<8x32xf32>
      %c0_27 = arith.constant 0 : index
      %c0_28 = arith.constant 0 : index
      %56 = vector.load %arg12[%c0_27, %c0_28] : memref<8x32xf32, #tpu.memory_space<vmem>>, vector<8x32xf32>
      %57 = arith.mulf %53, %56 : vector<8x32xf32>
      %58 = arith.mulf %52, %54 : vector<8x32xf32>
      %59 = arith.addf %57, %58 : vector<8x32xf32>
      %60 = math.tanh %59 : vector<8x32xf32>
      %61 = arith.mulf %55, %60 : vector<8x32xf32>
      %62 = arith.addi %0, %39 : i32
      %63 = vector.broadcast %62 : i32 to vector<8x1xi32>
      %64 = arith.cmpi slt, %63, %15 : vector<8x1xi32>
      %c0_29 = arith.constant 0 : index
      %c0_30 = arith.constant 0 : index
      %65 = vector.load %arg11[%c0_29, %c0_30] : memref<8x32xf32, #tpu.memory_space<vmem>>, vector<8x32xf32>
      %66 = vector.shape_cast %64 : vector<8x1xi1> to vector<8x1xi1>
      %67 = vector.broadcast %66 : vector<8x1xi1> to vector<8x32xi1>
      %68 = arith.select %67, %61, %65 : vector<8x32xi1>, vector<8x32xf32>
      %c0_31 = arith.constant 0 : index
      %c0_32 = arith.constant 0 : index
      %69 = vector.load %arg11[%c0_31, %c0_32] : memref<8x32xf32, #tpu.memory_space<vmem>>, vector<8x32xf32>
      tpu.vector_store %arg11[%c0_31, %c0_32], %68 {strides = array<i32>} : memref<8x32xf32, #tpu.memory_space<vmem>>, vector<8x32xf32>,
      %c0_33 = arith.constant 0 : index
      %c0_34 = arith.constant 0 : index
      %70 = vector.load %arg12[%c0_33, %c0_34] : memref<8x32xf32, #tpu.memory_space<vmem>>, vector<8x32xf32>
      %71 = vector.shape_cast %64 : vector<8x1xi1> to vector<8x1xi1>
      %72 = vector.broadcast %71 : vector<8x1xi1> to vector<8x32xi1>
      %73 = arith.select %72, %59, %70 : vector<8x32xi1>, vector<8x32xf32>
      %c0_35 = arith.constant 0 : index
      %c0_36 = arith.constant 0 : index
      %74 = vector.load %arg12[%c0_35, %c0_36] : memref<8x32xf32, #tpu.memory_space<vmem>>, vector<8x32xf32>
      tpu.vector_store %arg12[%c0_35, %c0_36], %73 {strides = array<i32>} : memref<8x32xf32, #tpu.memory_space<vmem>>, vector<8x32xf32>,
      %75 = arith.truncf %68 : vector<8x32xf32> to vector<8x32xbf16>
      %c0_37 = arith.constant 0 : index
      %c0_38 = arith.constant 0 : index
      %76 = vector.load %arg13[%c0_37, %c0_38] : memref<8x32xbf16, #tpu.memory_space<vmem>>, vector<8x32xbf16>
      tpu.vector_store %arg13[%c0_37, %c0_38], %75 {strides = array<i32>} : memref<8x32xbf16, #tpu.memory_space<vmem>>, vector<8x32xbf16>,
      %cst_39 = arith.constant 0.000000e+00 : f32
      %77 = vector.shape_cast %64 : vector<8x1xi1> to vector<8x1xi1>
      %78 = vector.broadcast %77 : vector<8x1xi1> to vector<8x32xi1>
      %79 = vector.broadcast %cst_39 : f32 to vector<8x32xf32>
      %80 = arith.select %78, %61, %79 : vector<8x32xi1>, vector<8x32xf32>
      %81 = arith.truncf %80 : vector<8x32xf32> to vector<8x32xbf16>
      %82 = arith.index_cast %39 : i32 to index
      %c0_40 = arith.constant 0 : index
      %c0_41 = arith.constant 0 : index
      %83 = vector.load %arg8[%82, %c0_40, %c0_41] : memref<8x8x32xbf16, #tpu.memory_space<vmem>>, vector<1x8x32xbf16>
      %84 = vector.shape_cast %83 : vector<1x8x32xbf16> to vector<8x32xbf16>
      %85 = vector.shape_cast %81 : vector<8x32xbf16> to vector<1x8x32xbf16>
      tpu.vector_store %arg8[%82, %c0_40, %c0_41], %85 {strides = array<i32>} : memref<8x8x32xbf16, #tpu.memory_space<vmem>>, vector<1x8x32xbf16>,
    }
    %c0_i32_20 = arith.constant 0 : i32
    %35 = arith.cmpi eq, %arg1, %c0_i32_20 : i32
    %36 = arith.extui %35 : i1 to i32
    %c0_i32_21 = arith.constant 0 : i32
    %37 = arith.cmpi ne, %36, %c0_i32_21 : i32
    scf.if %37 {
      %c0_22 = arith.constant 0 : index
      %c0_23 = arith.constant 0 : index
      %38 = vector.load %arg11[%c0_22, %c0_23] : memref<8x32xf32, #tpu.memory_space<vmem>>, vector<8x32xf32>
      %c0_24 = arith.constant 0 : index
      %c0_25 = arith.constant 0 : index
      %39 = vector.load %arg9[%c0_24, %c0_25] : memref<8x32xf32, #tpu.memory_space<vmem>>, vector<8x32xf32>
      tpu.vector_store %arg9[%c0_24, %c0_25], %38 {strides = array<i32>} : memref<8x32xf32, #tpu.memory_space<vmem>>, vector<8x32xf32>,
    } else {
    }
    return
  }
  func.func @transform_0(%arg0: i32, %arg1: i32, %arg2: memref<1xi32, #tpu.memory_space<smem>>) -> (i32, i32) {
    %c0_i32 = arith.constant 0 : i32
    %c0_i32_0 = arith.constant 0 : i32
    return %arg0, %c0_i32 : i32, i32
  }
  func.func @transform_1(%arg0: i32, %arg1: i32, %arg2: memref<1xi32, #tpu.memory_space<smem>>) -> (i32, i32, i32) {
    %c0_i32 = arith.constant 0 : i32
    %c0_i32_0 = arith.constant 0 : i32
    return %arg1, %arg0, %c0_i32 : i32, i32, i32
  }
  func.func @transform_2(%arg0: i32, %arg1: i32, %arg2: memref<1xi32, #tpu.memory_space<smem>>) -> (i32, i32) {
    %c0_i32 = arith.constant 0 : i32
    %c0_i32_0 = arith.constant 0 : i32
    %c0_i32_1 = arith.constant 0 : i32
    return %c0_i32, %c0_i32_0 : i32, i32
  }
  func.func @transform_3(%arg0: i32, %arg1: i32, %arg2: memref<1xi32, #tpu.memory_space<smem>>) -> (i32, i32) {
    %c0_i32 = arith.constant 0 : i32
    %c0_i32_0 = arith.constant 0 : i32
    %c0_i32_1 = arith.constant 0 : i32
    return %c0_i32, %c0_i32_0 : i32, i32
  }
  func.func @transform_4(%arg0: i32, %arg1: i32, %arg2: memref<1xi32, #tpu.memory_space<smem>>) -> (i32, i32) {
    %c0_i32 = arith.constant 0 : i32
    %c0_i32_0 = arith.constant 0 : i32
    %c0_i32_1 = arith.constant 0 : i32
    return %c0_i32, %c0_i32_0 : i32, i32
  }
  func.func @transform_5(%arg0: i32, %arg1: i32, %arg2: memref<1xi32, #tpu.memory_space<smem>>) -> (i32, i32, i32) {
    %c0_i32 = arith.constant 0 : i32
    %c0_i32_0 = arith.constant 0 : i32
    return %arg1, %arg0, %c0_i32 : i32, i32, i32
  }
  func.func @transform_6(%arg0: i32, %arg1: i32, %arg2: memref<1xi32, #tpu.memory_space<smem>>) -> (i32, i32) {
    %c0_i32 = arith.constant 0 : i32
    %c0_i32_0 = arith.constant 0 : i32
    return %arg0, %c0_i32 : i32, i32
  }
}

</mosaic_0001>

<bundles_post_ra>
// kernel: neg.1
= control target key start
LH: loop header
LB: loop body
LE: loop exit
PB: predicated region body
PF: predicated region fallthrough
CT: control target
= control target key end

     0   :  { %s24_s0 = inlined_call_operand.vmem [shape: s32[2], index: 0, kind: input, shape index: {}]   ;;  %s25_s1 = inlined_call_operand.vmem [shape: s32[2], index: 1, kind: output, shape index: {}]  }
   0x1   :  { %v2_v0 = vld [vmem:[%s24_s0] sm:$0x1] }
   0x2   :  { %v5_v1 = vsub.s32 0, %v2_v0 }
   0x4   :  { %7 = vst [vmem:[%s25_s1] sm:$0x1] %v5_v1 }

// kernel: _encode.1
= control target key start
LH: loop header
LB: loop body
LE: loop exit
PB: predicated region body
PF: predicated region fallthrough
CT: control target
= control target key end

     0   :  { %vm36_vm0 = vcmask 261120   ;;  %vm39_vm1 = vcmask 257024   ;;  %v473_v0 = vmov 0.0   ;;  %v474_v1 = vmov 0   ;;  %s666_s0 = inlined_call_operand.<no memory space> [shape: s32[1], index: 0, kind: input, shape index: {}]   ;;  %s667_s1 = inlined_call_operand.vmem [shape: s32[8,1], index: 1, kind: input, shape index: {}]   ;;  %s668_s2 = inlined_call_operand.vmem [shape: bf16[8,8,32], index: 2, kind: input, shape index: {}]   ;;  %s669_s3 = inlined_call_operand.vmem [shape: bf16[32,128], index: 3, kind: input, shape index: {}]   ;;  %s670_s4 = inlined_call_operand.vmem [shape: bf16[32,128], index: 4, kind: input, shape index: {}]   ;;  %s671_s5 = inlined_call_operand.vmem [shape: f32[1,128], index: 5, kind: input, shape index: {}]   ;;  %s672_s6 = inlined_call_operand.vmem [shape: bf16[8,8,32], index: 6, kind: output, shape index: {0}]   ;;  %s673_s7 = inlined_call_operand.vmem [shape: f32[8,32], index: 7, kind: output, shape index: {1}]  }
   0x1   :  { %p28_p0 = scmp.gt.s32.totalorder %s666_s0, 0  ;;  %p372_p1 = scmp.lt.s32.totalorder %s666_s0, 8  ;;  %37 = vst.msk [vmem:[#allocation3] sm:$0xff] %vm36_vm0, %v473_v0  ;;  %38 = vst.msk [vmem:[#allocation4] sm:$0xff] %vm36_vm0, %v473_v0 }
   0x2   :  { %40 = vst.msk [vmem:[#allocation5] sm:$0xf] %vm39_vm1, %v474_v1 }
   0x3   :  { %s675_s0 = smov (!%p28_p0, %s666_s0), 0 }
   0x4   :  { %s677_s0 = smov (!%p372_p1, %s675_s0), 8 }
   0x5   :  { %p377_p2 = scmp.ge.s32.totalorder %s677_s0, 8 }
   0x6   :  { %v475_v2 = vmov (!%p377_p2), 0  }
   0x7   :  { %44 = sbr.rel (%p377_p2) target bundleno = 14 (0xe), region = 29  ;;  %46 = vst.msk [vmem:[%s672_s6] sm:$0xf] (!%p377_p2), %vm39_vm1, %v475_v2  ;;  %47 = vst.msk [vmem:[%s672_s6 + $0x4] sm:$0xf] (!%p377_p2), %vm39_vm1, %v475_v2 }
   0x8   :  { %48 = vst.msk [vmem:[%s672_s6 + $0x8] sm:$0xf] (!%p377_p2), %vm39_vm1, %v475_v2  ;;  %49 = vst.msk [vmem:[%s672_s6 + $0xc] sm:$0xf] (!%p377_p2), %vm39_vm1, %v475_v2 }
   0x9   :  { %50 = vst.msk [vmem:[%s672_s6 + $0x10] sm:$0xf] (!%p377_p2), %vm39_vm1, %v475_v2  ;;  %51 = vst.msk [vmem:[%s672_s6 + $0x14] sm:$0xf] (!%p377_p2), %vm39_vm1, %v475_v2 }
   0xa   :  { %52 = vst.msk [vmem:[%s672_s6 + $0x18] sm:$0xf] (!%p377_p2), %vm39_vm1, %v475_v2  ;;  %53 = vst.msk [vmem:[%s672_s6 + $0x1c] sm:$0xf] (!%p377_p2), %vm39_vm1, %v475_v2 }
   0xe PF:  { %p378_p3 = scmp.le.s32.totalorder %s677_s0, 0 }
   0xf   :  { %v453_v3 = vld [vmem:[%s669_s3] sm:$0xff] (!%p378_p3)   ;;  %v454_v4 = vld [vmem:[%s669_s3 + $0x8] sm:$0xff] (!%p378_p3)   ;;  %v456_v6 = vld [vmem:[%s668_s2 + $0x10] sm:$0xff] (!%p378_p3)  }
  0x10   :  { %57 = sbr.rel (%p378_p3) target bundleno = 242 (0xf2), region = 33  ;;  %411 = vmatprep.subr.bf16.mxu0 (!%p378_p3), %v453_v3  ;;  %431 = vmatprep.subr.bf16.mxu1 (!%p378_p3), %v453_v3  ;;  %v455_v5 = vld [vmem:[%s668_s2] sm:$0xff] (!%p378_p3)   ;;  %v457_v7 = vld [vmem:[%s668_s2 + $0x8] sm:$0xff] (!%p378_p3)   ;;  %v458_v8 = vld [vmem:[%s668_s2 + $0x18] sm:$0xff] (!%p378_p3)  }
  0x11   :  { %412 = vmatpush3.bf16.msra.mxu0 (!%p378_p3), %v453_v3  ;;  %433 = vmatpush3.bf16.msra.mxu1 (!%p378_p3), %v453_v3  ;;  %v379_v9 = vld [vmem:[%s671_s5] ss:$0 sm:$0xff] (!%p378_p3) }
  0x12   :  { %413 = vmatprep.subr.bf16.mxu0 (!%p378_p3), %v454_v4  ;;  %432 = vmatprep.subr.bf16.mxu1 (!%p378_p3), %v454_v4 }
  0x13   :  { %415 = vmatprep.mubr.msk.bf16.mxu0 (!%p378_p3), %vm36_vm0, %v455_v5  ;;  %419 = vmatprep.mubr.msk.bf16.mxu1 (!%p378_p3), %vm36_vm0, %v456_v6 }
  0x15   :  { %414 = vmatpush3.bf16.msra.mxu0 (!%p378_p3), %v454_v4  ;;  %434 = vmatpush3.bf16.msra.mxu1 (!%p378_p3), %v454_v4 }
  0x18   :  { %416 = vmatmul.mubr.msk.bf16.vlgmr.msra.gmra.mrb[0].mxu0 %vm36_vm0, %v457_v7  ;;  %420 = vmatmul.mubr.msk.bf16.vlgmr.msra.gmra.mrb[0].mxu1 %vm36_vm0, %v458_v8 }
  0xeb   :  { %v417_v10 = vpop.f32.mrb[0].mxu0  ;;  %v421_v11 = vpop.f32.mrb[0].mxu1 }
  0xec   :  { %v165_v12 = vadd.f32 %v417_v10, %v379_v9  ;;  %v181_v13 = vadd.f32 %v421_v11, %v379_v9  ;;  %v156_v14 = vpop.f32.mrb[1].mxu0  ;;  %v172_v15 = vpop.f32.mrb[1].mxu1 }
  0xed   :  { %v157_v16 = vadd.f32 %v379_v9, %v156_v14  ;;  %v173_v17 = vadd.f32 %v379_v9, %v172_v15  ;;  %v418_v18 = vpop.f32.mrb[2].mxu0  ;;  %v422_v19 = vpop.f32.mrb[2].mxu1 }
  0xee   :  { %189 = vst [vmem:[#allocation2 + $0x10] sm:$0xff] %v165_v12  ;;  %193 = vst [vmem:[#allocation2 + $0x30] sm:$0xff] %v181_v13  ;;  %v168_v20 = vadd.f32 %v418_v18, %v379_v9  ;;  %v184_v21 = vadd.f32 %v422_v19, %v379_v9  ;;  %v159_v22 = vpop.f32.mrb[3].mxu0  ;;  %v175_v23 = vpop.f32.mrb[3].mxu1 }
  0xef   :  { %187 = vst [vmem:[#allocation2] sm:$0xff] %v157_v16  ;;  %191 = vst [vmem:[#allocation2 + $0x20] sm:$0xff] %v173_v17  ;;  %v160_v24 = vadd.f32 %v379_v9, %v159_v22  ;;  %v176_v25 = vadd.f32 %v379_v9, %v175_v23 }
  0xf0   :  { %190 = vst [vmem:[#allocation2 + $0x18] sm:$0xff] %v168_v20  ;;  %194 = vst [vmem:[#allocation2 + $0x38] sm:$0xff] %v184_v21 }
  0xf1   :  { %188 = vst [vmem:[#allocation2 + $0x8] sm:$0xff] %v160_v24  ;;  %192 = vst [vmem:[#allocation2 + $0x28] sm:$0xff] %v176_v25 }
  0xf2 PF:  { %v601_v26 = vld [vmem:[%s667_s1] sm:$0xff]  ;;  %v200_v29 = vlaneseq  ;;  %v616_v30 = vld [vmem:[%s670_s4 + $0x8] sm:$0xf]  ;;  %v621_v31 = vld [vmem:[%s670_s4 + $0xc] sm:$0xf]  ;;  %v476_v33 = vmov 0.5  }
  0xf3   :  { %v606_v27 = vld [vmem:[%s670_s4] sm:$0xf]  ;;  %v611_v28 = vld [vmem:[%s670_s4 + $0x4] sm:$0xf]  ;;  %369 = sbr.rel (%p378_p3) target bundleno = 977 (0x3d1), region = 67  ;;  %s629_s1 = smov (!%p378_p3), 0  }
  0xf4   :  { %v201_v32 = vand.u32 127, %v200_v29 }
  0xf6   :  { %vm202_vm2 = vcmp.ge.s32.totalorder %v201_v32, 64  ;;  %vm203_vm3 = vcmp.lt.s32.totalorder %v201_v32, 96 }
  0xf7   :  { %vm204_vm4 = vmand %vm202_vm2, %vm203_vm3 }
  0xf8   :  { %v623_v34 = vsel %vm204_vm4, 1.0, %v476_v33  ;;  %v625_v35 = vsel %vm204_vm4, 0.0, %v476_v33 }
  0xfa LB: > { %v392_v36 = vcombine.low %v606_v27, %v611_v28  ;;  %v477_v37 = vmov 0.0   ;;  %vm478_vm5 = vmmov 0   ;;  %v393_v38 = vcombine.low %v616_v30, %v621_v31  ;;  %v216_v39 = vld [vmem:[#allocation5] sm:$0xf]  ;;  %s391_s4 = sshll.u32 %s471_s1, 3  ;;  %s480_s22 = smov 64   ;;  %s471_s1 = sphi %s629_s1, %s210_s1  }
  0xfb   : > { %423 = vmatprep.subr.bf16.mxu0 %v477_v37  ;;  %427 = vmatprep.mubr.msk.bf16.mxu0 %vm478_vm5, %v477_v37  ;;  %s214_s21 = scalar_lea.vmem [#allocation2], %s391_s4  ;;  %v479_v46 = vmov 0   ;;  %v277_v50 = vld [vmem:[#allocation4] sm:$0xff]  ;;  %s481_s23 = smov 32   ;;  %v300_v51 = vstv %s471_s1  ;;  %v302_v55 = vld [vmem:[#allocation3] sm:$0xff] }
  0xfc   : > { %424 = vmatpush3.bf16.msra.mxu0 %v392_v36  ;;  %v215_v40 = vld [vmem:[%s214_s21] sm:$0xff]  ;;  %459 = vset.pattern.permute.xlu1 %v479_v46  ;;  %vm301_vm6 = vcmp.lt.s32.totalorder %v300_v51, %v601_v26  ;;  %s482_s24 = smov 96   ;;  %s397_s25 = sshll.u32 %s471_s1, 2 }
  0xfd   : > { %425 = vmatprep.subr.bf16.mxu0 %v477_v37  ;;  %460 = vset.pattern.permute.xlu0 %v479_v46  ;;  %v303_v54 = vsel %vm301_vm6, 1, %v479_v46  ;;  %s347_s28 = scalar_lea.vmem %s672_s6, %s397_s25  ;;  %s210_s1 = sadd.s32 1, %s471_s1  }
  0xfe   : > { %p209_p4 = scmp.ge.s32.totalorder %s210_s1, %s677_s0 }
 0x100   : > { %426 = vmatpush3.bf16.msra.mxu0 %v393_v38 }
 0x103   : > { %428 = vmatmul.mubr.msk.bf16.vlgmr.msra.gmra.mrb[0].mxu0 %vm36_vm0, %v216_v39 }
 0x1d6   : > { %v267_v41 = vpop.f32.mrb[0].mxu0 }
 0x1d7   : > { %v273_v42 = vadd.f32 %v267_v41, %v215_v40  ;;  %v429_v43 = vpop.f32.mrb[1].mxu0 }
 0x1d8   : > { %v270_v44 = vpop.f32.mrb[2].mxu0 }
 0x1d9   : > { %461 = vtanh.f32 %v273_v42  ;;  %v430_v45 = vpop.f32.mrb[3].mxu0 }
 0x1e3   : > { %v462_v47 = vpop.eup %461 }
 0x1e4   : > { %v275_v48 = vmul.f32 %v462_v47, %v623_v34 }
 0x1e6   : > { %v276_v49 = vadd.f32 %v275_v48, %v625_v35 }
 0x1e8   : > { %284 = vrot.lane.b32.xlu0 %v276_v49, %s480_s22 }
 0x1ec   : > { %279 = vrot.lane.b32.xlu0 %v277_v50, %s481_s23 }
 0x25a   : > { %v285_v52 = vpop.permute.xlu0 %284 }
 0x25b   : > { %v287_v53 = vmul.f32 %v285_v52, %v276_v49 }
 0x25d   : > { %289 = vrot.lane.b32.xlu1 %v287_v53, %s481_s23 }
 0x25e   : > { %v280_v56 = vpop.permute.xlu0 %279 }
 0x25f   : > { %v282_v57 = vmul.f32 %v280_v56, %v276_v49 }
 0x261   : > { %305 = vperm.xlu1 %459, %v303_v54  }
 0x265   : > { %309 = vrot.lane.b32.xlu1 %v302_v55, %s482_s24 }
 0x2cf   : > { %v290_v58 = vpop.permute.xlu1 %289 }
 0x2d0   : > { %v292_v59 = vadd.f32 %v290_v58, %v282_v57 }
 0x2d2   : > { %463 = vtanh.f32 %v292_v59 }
 0x2dc   : > { %v464_v60 = vpop.eup %463 }
 0x2dd   : > { %295 = vrot.lane.b32.xlu0 %v464_v60, %s480_s22 }
 0x2e0   : > { %v306_v61 = vpop.permute.xlu1 %305 }
 0x2e1   : > { %320 = vrot.lane.b32.xlu0 %v277_v50, %s481_s23  ;;  %vm307_vm7 = vcmp.eq.s32.totalorder %v306_v61, 1 }
 0x2e4   : > { %v310_v63 = vpop.permute.xlu1 %309 }
 0x34f   : > { %v296_v62 = vpop.permute.xlu0 %295 }
 0x350   : > { %v298_v0 = vmul.f32 %v296_v62, %v276_v49 }
 0x352   : > { %v312_v1 = vsel %vm307_vm7, %v298_v0, %v310_v63  ;;  %v338_v3 = vsel %vm307_vm7, %v298_v0, 0.0 }
 0x353   : > { %314 = vrot.lane.b32.xlu1 %v312_v1, %s481_s23  ;;  %v321_v2 = vpop.permute.xlu0 %320  ;;  %v400_v5 = vpack.c.bf16 %v312_v1, %v312_v1  ;;  %v401_v6 = vpack.c.bf16 %v338_v3, %v338_v3 }
 0x354   : > { %v323_v4 = vsel %vm307_vm7, %v292_v59, %v321_v2 }
 0x355   : > { %325 = vrot.lane.b32.xlu0 %v323_v4, %s482_s24 }
 0x357   : > { %333 = vrot.lane.b32.xlu1 %v400_v5, %s481_s23 }
 0x359   : > { %343 = vrot.lane.b32.xlu0 %v401_v6, %s481_s23 }
 0x3c5   : > { %v315_v7 = vpop.permute.xlu1 %314 }
 0x3c6   : > { %317 = vst.msk [vmem:[#allocation3] sm:$0xff] %vm36_vm0, %v315_v7 }
 0x3c7   : > { %v326_v8 = vpop.permute.xlu0 %325 }
 0x3c8   : > { %328 = vst.msk [vmem:[#allocation4] sm:$0xff] %vm36_vm0, %v326_v8 }
 0x3c9   : > { %v334_v9 = vpop.permute.xlu1 %333 }
 0x3ca   : > { %337 = vst.msk [vmem:[#allocation5] sm:$0xf] %vm39_vm1, %v334_v9  ;;  %212 = sbr.rel (!%p209_p4) target bundleno = 250 (0xfa), region = 73 }
 0x3cb   : > { %v344_v10 = vpop.permute.xlu0 %343 }
 0x3cc   : > { %348 = vst.msk [vmem:[%s347_s28] sm:$0xf] %vm39_vm1, %v344_v10 }
 0x3d1 PF:  { %v352_v11 = vld [vmem:[#allocation3] sm:$0xff] }
 0x3d2   :  { %354 = vst.msk [vmem:[%s673_s7] sm:$0xff] %vm36_vm0, %v352_v11 }

</bundles_post_ra>
